<compile_context>
chip_gen: v5e
topology: v5e:2x2
jax: 0.10.0
libtpu: 0.0.40
codegen_flags: <defaults>
</compile_context>

<pallas_src>
import functools

import jax
import jax.numpy as jnp
from jax.experimental import pallas as pl
from jax.experimental.pallas import tpu as pltpu

_LANE = 128
_SUBLANE = 8


def _round_up(n: int, m: int) -> int:
    return ((n + m - 1) // m) * m


def _cdiv(a: int, b: int) -> int:
    return -(-a // b)


def _tpu_vmem_capacity_bytes() -> int:
    """Physical per-core VMEM (128 MiB on v5e/v6e, 64 MiB on v7x)."""
    try:
        return int(pltpu.get_tpu_info().vmem_capacity_bytes)
    except Exception:
        return 64 << 20  # conservative fallback: v7x per-TensorCore VMEM


@functools.lru_cache(maxsize=None)
def _single_buffering_supported() -> bool:
    """Probe once whether BlockSpec(pipeline_mode=pl.Buffered(1)) lowers on this JAX."""
    def _copy(x_ref, o_ref):
        o_ref[...] = x_ref[...]

    try:
        x = jnp.zeros((_SUBLANE, _LANE), jnp.float32)
        out = pl.pallas_call(
            _copy,
            out_shape=jax.ShapeDtypeStruct((_SUBLANE, _LANE), jnp.float32),
            grid=(1,),
            in_specs=[pl.BlockSpec((_SUBLANE, _LANE), lambda i: (0, 0),
                                   pipeline_mode=pl.Buffered(1))],
            out_specs=pl.BlockSpec((_SUBLANE, _LANE), lambda i: (0, 0)),
        )(x)
        jax.block_until_ready(out)
        return True
    except Exception:
        return False


def _const_spec(block_shape, index_map):
    """BlockSpec for an input whose block never changes: single-buffer it if supported."""
    if _single_buffering_supported():
        return pl.BlockSpec(block_shape, index_map, pipeline_mode=pl.Buffered(1))
    return pl.BlockSpec(block_shape, index_map)


# --------------------------------------------------------------------------------------
# Kernels
# --------------------------------------------------------------------------------------
def _mlp_head_resident_kernel(x_ref, w1_ref, b1_ref, w2_ref, b2_ref, o_ref):
    """grid = (batch_tiles,). w1/w2/biases resident in VMEM; fused Linear-ReLU-Linear."""
    h = jnp.dot(x_ref[...], w1_ref[...], preferred_element_type=jnp.float32)
    h = jnp.maximum(h + b1_ref[...], 0.0)
    # Dropout is the identity in eval mode.
    # TODO(synk): training-mode dropout (pltpu.prng_seed / prng_random_bits) not implemented.
    out = jnp.dot(h.astype(w2_ref.dtype), w2_ref[...], preferred_element_type=jnp.float32)
    o_ref[...] = (out + b2_ref[...]).astype(o_ref.dtype)


def _mlp_head_ktiled_kernel(x_ref, w1_ref, b1_ref, w2_ref, b2_ref, o_ref, acc_ref):
    """grid = (batch_tiles, k_tiles); K is the reduction axis (last, 'arbitrary')."""
    k = pl.program_id(1)

    @pl.when(k == 0)
    def _():
        # Seed the accumulator with the layer-1 bias: moves the (tb, H) add off the
        # serialized last-K-step epilogue.
        acc_ref[...] = jnp.broadcast_to(b1_ref[...], acc_ref.shape)

    acc_ref[...] += jnp.dot(x_ref[...], w1_ref[...], preferred_element_type=jnp.float32)

    @pl.when(k == pl.num_programs(1) - 1)
    def _():
        h = jnp.maximum(acc_ref[...], 0.0)            # bias already folded into acc
        # TODO(synk): training-mode dropout not implemented (identity at inference).
        out = jnp.dot(h.astype(w2_ref.dtype), w2_ref[...],
                      preferred_element_type=jnp.float32)
        o_ref[...] = (out + b2_ref[...]).astype(o_ref.dtype)


# --------------------------------------------------------------------------------------
# Wrapper
# --------------------------------------------------------------------------------------
class MLPHeadPallas:
    """Fused Pallas TPU forward for MLPHead(input_dim, [input_dim//2], n_classes, 'relu').

    Weights: w1 (D, H), b1 (H,) or (1, H), w2 (H, C), b2 (C,) or (1, C).
    Padding / casting of the weights is done once here (hoisted out of the forward).
    operand_dtype=jnp.bfloat16 is recommended on v5e/v6e/v7x (f32 MXU accumulation);
    the default keeps the caller dtype so f32 matches the PyTorch reference closely.
    TODO(synk): optional fp8 w1 storage for v7x's native-fp8 MXU when accuracy allows.
    """

    def __init__(self, w1, b1, w2, b2, *, batch_tile: int = 256,
                 operand_dtype=None, vmem_budget_bytes=None):
        D, H = w1.shape
        Hc, C = w2.shape
        assert Hc == H, (w1.shape, w2.shape)
        self.D, self.H, self.C = D, H, C
        self.batch_tile = int(batch_tile)
        self.op_dtype = (jnp.dtype(operand_dtype) if operand_dtype is not None
                         else jnp.dtype(w1.dtype))

        self.D_pad = _round_up(D, _LANE)
        self.H_pad = _round_up(H, _LANE)
        # Lane-dense output; align to 256 once C exceeds one lane group (256-wide MXU).
        self.C_pad = _LANE if C <= _LANE else _round_up(C, 2 * _LANE)

        b1 = jnp.reshape(b1, (1, H))
        b2 = jnp.reshape(b2, (1, C))

        # Pad / cast the weights exactly once. Zero padding is mathematically inert
        # (zeros through dot / relu / zero w2 rows) and is sliced away from the output.
        self.w1_p = jnp.pad(w1.astype(self.op_dtype),
                            ((0, self.D_pad - D), (0, self.H_pad - H)))
        self.b1_p = jnp.pad(b1.astype(jnp.float32), ((0, 0), (0, self.H_pad - H)))
        self.w2_p = jnp.pad(w2.astype(self.op_dtype),
                            ((0, self.H_pad - H), (0, self.C_pad - C)))
        self.b2_p = jnp.pad(b2.astype(jnp.float32), ((0, 0), (0, self.C_pad - C)))

        self._vmem_capacity = _tpu_vmem_capacity_bytes()
        # Working budget for tile/path selection: leave headroom for Mosaic internals.
        self._vmem_budget = (int(vmem_budget_bytes) if vmem_budget_bytes is not None
                             else (self._vmem_capacity * 3) // 4)
        self.last_plan = None  # filled at trace time (debug / introspection only)

        self._forward = jax.jit(self._forward_impl)

    # ---- trace-time footprint estimates ------------------------------------------
    def _resident_bytes(self, tb, op_isz, out_isz):
        w_buf = 1 if _single_buffering_supported() else 2
        return (2 * tb * self.D_pad * op_isz                  # x tile (double-buffered)
                + w_buf * self.D_pad * self.H_pad * op_isz    # w1 (resident)
                + w_buf * self.H_pad * self.C_pad * op_isz    # w2 (resident)
                + w_buf * (self.H_pad + self.C_pad) * 4       # biases (f32)
                + 2 * tb * self.C_pad * out_isz               # out tile (double-buffered)
                + 2 * tb * self.H_pad * 4)                    # f32 hidden temp headroom

    def _ktiled_bytes(self, tb, tk, op_isz, out_isz):
        w_buf = 1 if _single_buffering_supported() else 2
        return (2 * tb * tk * op_isz                          # x K-tile
                + 2 * tk * self.H_pad * op_isz                # w1 K-tile
                + w_buf * self.H_pad * self.C_pad * op_isz    # w2 (resident)
                + w_buf * (self.H_pad + self.C_pad) * 4       # biases
                + 2 * tb * self.C_pad * out_isz               # out tile
                + 2 * tb * self.H_pad * 4)                    # acc scratch + epilogue temp

    # ---- forward -------------------------------------------------------------------
    def _forward_impl(self, x, w1_p, b1_p, w2_p, b2_p):
        orig_shape = x.shape
        if x.ndim != 2:
            x = x.reshape(-1, orig_shape[-1])
        B, Din = x.shape
        assert Din == self.D, f"expected input dim {self.D}, got {Din}"
        out_dtype = x.dtype
        x = x.astype(self.op_dtype)
        op_isz = jnp.dtype(self.op_dtype).itemsize
        out_isz = jnp.dtype(out_dtype).itemsize

        # Balanced batch tiles (B_pad overshoots B by < 8 rows per tile); use >= 2 tiles
        # once B is big enough so the 'parallel' axis can shard across v7x's two cores.
        n_b = max(1, _cdiv(B, self.batch_tile))
        if n_b == 1 and B >= 2 * _SUBLANE:
            n_b = 2
        tb = _round_up(_cdiv(B, n_b), _SUBLANE)
        B_pad = n_b * tb

        budget = self._vmem_budget
        if self._resident_bytes(tb, op_isz, out_isz) <= budget:
            mode, tk = "resident", self.D_pad
            footprint = self._resident_bytes(tb, op_isz, out_isz)
        else:
            # Fallback: K-tiled layer-1.  Pick the largest lane-aligned divisor of D_pad
            # that fits so no re-padding of the (already padded) weights is ever needed.
            mode = "ktiled"
            m = self.D_pad // _LANE
            divisors = sorted((d * _LANE for d in range(1, m + 1) if m % d == 0),
                              reverse=True)
            tk = next((t for t in divisors
                       if self._ktiled_bytes(tb, t, op_isz, out_isz) <= budget), _LANE)
            footprint = self._ktiled_bytes(tb, tk, op_isz, out_isz)

        # Never set the scoped-VMEM limit below the actual tile footprint; otherwise use
        # the generation-aware capacity (128 MiB v5e/v6e, 64 MiB v7x) as the ceiling.
        vmem_limit = max(32 << 20, footprint + (4 << 20))
        vmem_limit = min(vmem_limit, max(self._vmem_capacity, footprint + (4 << 20)))
        self.last_plan = dict(mode=mode, tb=tb, tk=tk, n_b=n_b, B_pad=B_pad,
                              footprint=footprint, vmem_limit=int(vmem_limit))

        x_p = jnp.pad(x, ((0, B_pad - B), (0, self.D_pad - self.D)))

        if mode == "resident":
            grid = (n_b,)
            in_specs = [
                pl.BlockSpec((tb, self.D_pad), lambda i: (i, 0)),
                _const_spec((self.D_pad, self.H_pad), lambda i: (0, 0)),
                _const_spec((1, self.H_pad), lambda i: (0, 0)),
                _const_spec((self.H_pad, self.C_pad), lambda i: (0, 0)),
                _const_spec((1, self.C_pad), lambda i: (0, 0)),
            ]
            out_specs = pl.BlockSpec((tb, self.C_pad), lambda i: (i, 0))
            scratch_shapes = []
            kernel = _mlp_head_resident_kernel
            dim_sem = ("parallel",)
        else:
            n_k = self.D_pad // tk
            grid = (n_b, n_k)
            in_specs = [
                pl.BlockSpec((tb, tk), lambda i, k: (i, k)),
                pl.BlockSpec((tk, self.H_pad), lambda i, k: (k, 0)),
                _const_spec((1, self.H_pad), lambda i, k: (0, 0)),
                _const_spec((self.H_pad, self.C_pad), lambda i, k: (0, 0)),
                _const_spec((1, self.C_pad), lambda i, k: (0, 0)),
            ]
            out_specs = pl.BlockSpec((tb, self.C_pad), lambda i, k: (i, 0))
            scratch_shapes = [pltpu.VMEM((tb, self.H_pad), jnp.float32)]
            kernel = _mlp_head_ktiled_kernel
            dim_sem = ("parallel", "arbitrary")

        out = pl.pallas_call(
            kernel,
            out_shape=jax.ShapeDtypeStruct((B_pad, self.C_pad), out_dtype),
            grid_spec=pltpu.PrefetchScalarGridSpec(
                num_scalar_prefetch=0,
                grid=grid,
                in_specs=in_specs,
                out_specs=out_specs,
                scratch_shapes=scratch_shapes,
            ),
            compiler_params=pltpu.CompilerParams(
                dimension_semantics=dim_sem,
                vmem_limit_bytes=int(vmem_limit),
            ),
        )(x_p, w1_p, b1_p, w2_p, b2_p)

        out = out[:B, :self.C]
        if len(orig_shape) != 2:
            out = out.reshape(*orig_shape[:-1], self.C)
        return out

    def __call__(self, x):
        return self._forward(x, self.w1_p, self.b1_p, self.w2_p, self.b2_p)


def mlp_head_forward(x, w1, b1, w2, b2, **kwargs):
    """One-off functional wrapper. For repeated calls build MLPHeadPallas once
    (the weight pad/cast is hoisted into its constructor)."""
    return MLPHeadPallas(w1, b1, w2, b2, **kwargs)(x)


# --------------------------------------------------------------------------------------
# Reference & init helpers
# --------------------------------------------------------------------------------------
def init_mlp_head_params(key, input_dim, hidden_dim, n_classes, dtype=jnp.float32):
    """Deterministic init mimicking nn.Linear default (uniform +-1/sqrt(fan_in))."""
    k1, k2, k3, k4 = jax.random.split(key, 4)
    bound1 = 1.0 / jnp.sqrt(input_dim)
    bound2 = 1.0 / jnp.sqrt(hidden_dim)
    w1 = jax.random.uniform(k1, (input_dim, hidden_dim), dtype, -bound1, bound1)
    b1 = jax.random.uniform(k2, (1, hidden_dim), dtype, -bound1, bound1)
    w2 = jax.random.uniform(k3, (hidden_dim, n_classes), dtype, -bound2, bound2)
    b2 = jax.random.uniform(k4, (1, n_classes), dtype, -bound2, bound2)
    return w1, b1, w2, b2


def mlp_head_reference(x, w1, b1, w2, b2):
    h = jnp.maximum(x @ w1 + b1, 0.0)
    return h @ w2 + b2


if __name__ == "__main__":
    key = jax.random.PRNGKey(0)

    # --- Test 1: MLPHead defaults at small shapes (input_dim=32 -> hidden=[16], C=2). ---
    B, D, H, C = 8, 32, 16, 2
    kx, kp = jax.random.split(key)
    x = jax.random.normal(kx, (B, D), jnp.float32)
    w1, b1, w2, b2 = init_mlp_head_params(kp, D, H, C)

    head = MLPHeadPallas(w1, b1, w2, b2)          # weights padded/cast once here
    out = jax.block_until_ready(head(x))          # resident path, single grid step
    ref = mlp_head_reference(x, w1, b1, w2, b2)
    assert out.shape == (B, C), out.shape
    assert jnp.allclose(out, ref, atol=1e-5, rtol=1e-5), "fp32 mismatch vs reference"

    # --- Test 2: ragged batch, balanced tiles (2 x 72), forced K-tiled fallback path. ---
    B2, D2, H2, C2 = 144, 384, 160, 3
    kx2, kp2 = jax.random.split(kp)
    x2 = jax.random.normal(kx2, (B2, D2), jnp.float32)
    w1b, b1b, w2b, b2b = init_mlp_head_params(kp2, D2, H2, C2)
    head2 = MLPHeadPallas(w1b, b1b, w2b, b2b, batch_tile=128,
                          vmem_budget_bytes=800 * 1024)   # force the K-tiled fallback
    out2 = jax.block_until_ready(head2(x2))
    ref2 = mlp_head_reference(x2, w1b, b1b, w2b, b2b)
    assert out2.shape == (B2, C2), out2.shape
    assert jnp.allclose(out2, ref2, atol=1e-4, rtol=1e-4), "k-tiled mismatch vs reference"

    # --- Test 3: bf16 operands (f32 accumulation), recommended on v5e/v6e/v7x MXUs. ---
    head_bf16 = MLPHeadPallas(w1, b1, w2, b2, operand_dtype=jnp.bfloat16)
    out_bf16 = jax.block_until_ready(head_bf16(x))
    assert out_bf16.shape == (B, C)
    assert jnp.allclose(out_bf16, ref, atol=5e-2, rtol=5e-2), "bf16 mismatch vs reference"

    print("KERNEL_OK")
</pallas_src>

<mosaic_0001>
module attributes {stable_mosaic.version = 11 : i64} {
  func.func @_mlp_head_resident_kernel(%arg0: i32, %arg1: memref<8x128xf32, #tpu.memory_space<vmem>>, %arg2: memref<128x128xf32, #tpu.memory_space<vmem>>, %arg3: memref<1x128xf32, #tpu.memory_space<vmem>>, %arg4: memref<128x128xf32, #tpu.memory_space<vmem>>, %arg5: memref<1x128xf32, #tpu.memory_space<vmem>>, %arg6: memref<8x128xf32, #tpu.memory_space<vmem>>) attributes {dimension_semantics = [#tpu.dimension_semantics<parallel>], iteration_bounds = array<i64: 1>, scalar_prefetch = 0 : i64, scratch_operands = 0 : i64, tpu.core_type = #tpu.core_type<tc>, window_params = [{transform_indices = @transform_0, window_bounds = array<i64: 8, 128>}, {pipeline_mode = #tpu.pipeline_mode<synchronous>, transform_indices = @transform_1, window_bounds = array<i64: 128, 128>}, {pipeline_mode = #tpu.pipeline_mode<synchronous>, transform_indices = @transform_2, window_bounds = array<i64: 1, 128>}, {pipeline_mode = #tpu.pipeline_mode<synchronous>, transform_indices = @transform_3, window_bounds = array<i64: 128, 128>}, {pipeline_mode = #tpu.pipeline_mode<synchronous>, transform_indices = @transform_4, window_bounds = array<i64: 1, 128>}, {transform_indices = @transform_5, window_bounds = array<i64: 8, 128>}]} {
    %c0 = arith.constant 0 : index
    %c0_0 = arith.constant 0 : index
    %0 = vector.load %arg1[%c0, %c0_0] : memref<8x128xf32, #tpu.memory_space<vmem>>, vector<8x128xf32>
    %c0_1 = arith.constant 0 : index
    %c0_2 = arith.constant 0 : index
    %1 = vector.load %arg2[%c0_1, %c0_2] : memref<128x128xf32, #tpu.memory_space<vmem>>, vector<128x128xf32>
    %cst = arith.constant dense<0.000000e+00> : vector<8x128xf32>
    %2 = tpu.matmul %0, %1, %cst {dimension_numbers = #tpu.dot_dimension_numbers<[1], [0], [0], [1], [0, 0, 1, 1], [], []>} : vector<8x128xf32>, vector<128x128xf32>, vector<8x128xf32> -> vector<8x128xf32>
    %c0_3 = arith.constant 0 : index
    %c0_4 = arith.constant 0 : index
    %3 = vector.load %arg3[%c0_3, %c0_4] : memref<1x128xf32, #tpu.memory_space<vmem>>, vector<1x128xf32>
    %4 = vector.broadcast %3 : vector<1x128xf32> to vector<8x128xf32>
    %5 = arith.addf %2, %4 : vector<8x128xf32>
    %cst_5 = arith.constant 0.000000e+00 : f32
    %6 = vector.broadcast %cst_5 : f32 to vector<8x128xf32>
    %7 = arith.maximumf %5, %6 : vector<8x128xf32>
    %c0_6 = arith.constant 0 : index
    %c0_7 = arith.constant 0 : index
    %8 = vector.load %arg4[%c0_6, %c0_7] : memref<128x128xf32, #tpu.memory_space<vmem>>, vector<128x128xf32>
    %cst_8 = arith.constant dense<0.000000e+00> : vector<8x128xf32>
    %9 = tpu.matmul %7, %8, %cst_8 {dimension_numbers = #tpu.dot_dimension_numbers<[1], [0], [0], [1], [0, 0, 1, 1], [], []>} : vector<8x128xf32>, vector<128x128xf32>, vector<8x128xf32> -> vector<8x128xf32>
    %c0_9 = arith.constant 0 : index
    %c0_10 = arith.constant 0 : index
    %10 = vector.load %arg5[%c0_9, %c0_10] : memref<1x128xf32, #tpu.memory_space<vmem>>, vector<1x128xf32>
    %11 = vector.broadcast %10 : vector<1x128xf32> to vector<8x128xf32>
    %12 = arith.addf %9, %11 : vector<8x128xf32>
    %c0_11 = arith.constant 0 : index
    %c0_12 = arith.constant 0 : index
    %13 = vector.load %arg6[%c0_11, %c0_12] : memref<8x128xf32, #tpu.memory_space<vmem>>, vector<8x128xf32>
    tpu.vector_store %arg6[%c0_11, %c0_12], %12 {strides = array<i32>} : memref<8x128xf32, #tpu.memory_space<vmem>>, vector<8x128xf32>,
    return
  }
  func.func @transform_0(%arg0: i32) -> (i32, i32) {
    %c0_i32 = arith.constant 0 : i32
    %c0_i32_0 = arith.constant 0 : i32
    return %arg0, %c0_i32 : i32, i32
  }
  func.func @transform_1(%arg0: i32) -> (i32, i32) {
    %c0_i32 = arith.constant 0 : i32
    %c0_i32_0 = arith.constant 0 : i32
    %c0_i32_1 = arith.constant 0 : i32
    return %c0_i32, %c0_i32_0 : i32, i32
  }
  func.func @transform_2(%arg0: i32) -> (i32, i32) {
    %c0_i32 = arith.constant 0 : i32
    %c0_i32_0 = arith.constant 0 : i32
    %c0_i32_1 = arith.constant 0 : i32
    return %c0_i32, %c0_i32_0 : i32, i32
  }
  func.func @transform_3(%arg0: i32) -> (i32, i32) {
    %c0_i32 = arith.constant 0 : i32
    %c0_i32_0 = arith.constant 0 : i32
    %c0_i32_1 = arith.constant 0 : i32
    return %c0_i32, %c0_i32_0 : i32, i32
  }
  func.func @transform_4(%arg0: i32) -> (i32, i32) {
    %c0_i32 = arith.constant 0 : i32
    %c0_i32_0 = arith.constant 0 : i32
    %c0_i32_1 = arith.constant 0 : i32
    return %c0_i32, %c0_i32_0 : i32, i32
  }
  func.func @transform_5(%arg0: i32) -> (i32, i32) {
    %c0_i32 = arith.constant 0 : i32
    %c0_i32_0 = arith.constant 0 : i32
    return %arg0, %c0_i32 : i32, i32
  }
}

</mosaic_0001>

<bundles_post_ra>
// kernel: _forward_impl.1
= control target key start
LH: loop header
LB: loop body
LE: loop exit
PB: predicated region body
PF: predicated region fallthrough
CT: control target
= control target key end

     0   :  { %10 = vsyncpa [#allocation3], 0  ;;  %s251_s0 = inlined_call_operand.vmem [shape: f32[8,128], index: 0, kind: input, shape index: {}]   ;;  %s252_s1 = inlined_call_operand.hbm [shape: f32[128,128], index: 1, kind: input, shape index: {}]   ;;  %s253_s2 = inlined_call_operand.vmem [shape: f32[1,128], index: 2, kind: input, shape index: {}]   ;;  %s254_s3 = inlined_call_operand.hbm [shape: f32[128,128], index: 3, kind: input, shape index: {}]   ;;  %s255_s4 = inlined_call_operand.vmem [shape: f32[1,128], index: 4, kind: input, shape index: {}]   ;;  %s256_s5 = inlined_call_operand.vmem [shape: f32[8,128], index: 5, kind: output, shape index: {}]  }
   0x1   :  { %s18_s20 = sshll.u32 %s252_s1, 4  ;;  %s19_s20 = int_to_ptr.hbm [resolvable:$true] %s18_s20 }
   0x2   :  { %11 = vsyncpa [#allocation5], 0  ;;  %s199_s21 = smov [#allocation2]   ;;  %s33_s25 = sshll.u32 %s254_s3, 4  ;;  %s34_s25 = int_to_ptr.hbm [resolvable:$true] %s33_s25 }
   0x3   :  { %s20_s22 = sshll.u32 %s199_s21, 4  ;;  %s200_s26 = smov 128   ;;  %s21_s22 = int_to_ptr.vmem [resolvable:$true] %s20_s22 }
   0x4   :  { %s201_s27 = smov 8   ;;  %s202_s28 = smov [#allocation4]  }
   0x5   :  { %26 = dma.hbm_to_vmem [thread:$0]  %s19_s20, 2048, %s21_s22, [#allocation3], %s200_s26, %s200_s26, %s201_s27  }
   0x6   :  { %s35_s29 = sshll.u32 %s202_s28, 4  ;;  %s36_s29 = int_to_ptr.vmem [resolvable:$true] %s35_s29 }
   0x7   :  { %41 = dma.hbm_to_vmem [thread:$0]  %s34_s25, 2048, %s36_s29, [#allocation5], %s200_s26, %s200_s26, %s201_s27  }
   0x8   :  { %195 = dma.done.wait [#allocation3], 2048  }
   0x9   :  { %196 = vsyncadd [#allocation3], 4294965248 }
   0xa   :  { %197 = dma.done.wait [#allocation5], 2048  }
   0xb   :  { %198 = vsyncadd [#allocation5], 4294965248  ;;  %v68_v0 = vld [vmem:[#allocation2 + $0x78] sm:$0xff]  ;;  %v67_v1 = vld [vmem:[#allocation2 + $0x70] sm:$0xff] }
   0xc   :  { %73 = vmatpush.msra.mxu0 %v68_v0  ;;  %v66_v2 = vld [vmem:[#allocation2 + $0x68] sm:$0xff]  ;;  %v65_v3 = vld [vmem:[#allocation2 + $0x60] sm:$0xff]  ;;  %v109_v4 = vld [vmem:[#allocation4 + $0x78] sm:$0xff] }
   0xd   :  { %v64_v5 = vld [vmem:[#allocation2 + $0x58] sm:$0xff]  ;;  %114 = vmatpush.msra.mxu1 %v109_v4  ;;  %v108_v6 = vld [vmem:[#allocation4 + $0x70] sm:$0xff]  ;;  %v107_v7 = vld [vmem:[#allocation4 + $0x68] sm:$0xff] }
   0xe   :  { %74 = vmatpush.msra.mxu0 %v67_v1  ;;  %v63_v8 = vld [vmem:[#allocation2 + $0x50] sm:$0xff]  ;;  %v106_v9 = vld [vmem:[#allocation4 + $0x60] sm:$0xff]  ;;  %v62_v10 = vld [vmem:[#allocation2 + $0x48] sm:$0xff] }
   0xf   :  { %115 = vmatpush.msra.mxu1 %v108_v6  ;;  %v105_v11 = vld [vmem:[#allocation4 + $0x58] sm:$0xff]  ;;  %v61_v12 = vld [vmem:[#allocation2 + $0x40] sm:$0xff]  ;;  %v104_v13 = vld [vmem:[#allocation4 + $0x50] sm:$0xff] }
  0x10   :  { %75 = vmatpush.msra.mxu0 %v66_v2  ;;  %v60_v14 = vld [vmem:[#allocation2 + $0x38] sm:$0xff]  ;;  %v103_v15 = vld [vmem:[#allocation4 + $0x48] sm:$0xff]  ;;  %v59_v16 = vld [vmem:[#allocation2 + $0x30] sm:$0xff] }
  0x11   :  { %116 = vmatpush.msra.mxu1 %v107_v7  ;;  %v102_v17 = vld [vmem:[#allocation4 + $0x40] sm:$0xff]  ;;  %v58_v18 = vld [vmem:[#allocation2 + $0x28] sm:$0xff]  ;;  %v101_v19 = vld [vmem:[#allocation4 + $0x38] sm:$0xff] }
  0x12   :  { %76 = vmatpush.msra.mxu0 %v65_v3  ;;  %v57_v20 = vld [vmem:[#allocation2 + $0x20] sm:$0xff]  ;;  %v100_v21 = vld [vmem:[#allocation4 + $0x30] sm:$0xff]  ;;  %v56_v22 = vld [vmem:[#allocation2 + $0x18] sm:$0xff] }
  0x13   :  { %117 = vmatpush.msra.mxu1 %v106_v9  ;;  %v99_v23 = vld [vmem:[#allocation4 + $0x28] sm:$0xff]  ;;  %v55_v24 = vld [vmem:[#allocation2 + $0x10] sm:$0xff]  ;;  %v98_v25 = vld [vmem:[#allocation4 + $0x20] sm:$0xff] }
  0x14   :  { %77 = vmatpush.msra.mxu0 %v64_v5  ;;  %v54_v26 = vld [vmem:[#allocation2 + $0x8] sm:$0xff]  ;;  %v97_v27 = vld [vmem:[#allocation4 + $0x18] sm:$0xff]  ;;  %v53_v28 = vld [vmem:[#allocation2] sm:$0xff] }
  0x15   :  { %118 = vmatpush.msra.mxu1 %v105_v11  ;;  %v52_v29 = vld [vmem:[%s251_s0] sm:$0xff]  ;;  %v96_v30 = vld [vmem:[#allocation4 + $0x10] sm:$0xff]  ;;  %v95_v31 = vld [vmem:[#allocation4 + $0x8] sm:$0xff] }
  0x16   :  { %78 = vmatpush.msra.mxu0 %v63_v8  ;;  %v94_v32 = vld [vmem:[#allocation4] sm:$0xff] }
  0x17   :  { %119 = vmatpush.msra.mxu1 %v104_v13  ;;  %v145_v33 = vld [vmem:[%s253_s2] ss:$0 sm:$0xff] }
  0x18   :  { %79 = vmatpush.msra.mxu0 %v62_v10  ;;  %v146_v37 = vld [vmem:[%s255_s4] ss:$0 sm:$0xff] }
  0x19   :  { %120 = vmatpush.msra.mxu1 %v103_v15 }
  0x1a   :  { %80 = vmatpush.msra.mxu0 %v61_v12 }
  0x1b   :  { %121 = vmatpush.msra.mxu1 %v102_v17 }
  0x1c   :  { %81 = vmatpush.msra.mxu0 %v60_v14 }
  0x1d   :  { %122 = vmatpush.msra.mxu1 %v101_v19 }
  0x1e   :  { %82 = vmatpush.msra.mxu0 %v59_v16 }
  0x1f   :  { %123 = vmatpush.msra.mxu1 %v100_v21 }
  0x20   :  { %83 = vmatpush.msra.mxu0 %v58_v18 }
  0x21   :  { %124 = vmatpush.msra.mxu1 %v99_v23 }
  0x22   :  { %84 = vmatpush.msra.mxu0 %v57_v20 }
  0x23   :  { %125 = vmatpush.msra.mxu1 %v98_v25 }
  0x24   :  { %85 = vmatpush.msra.mxu0 %v56_v22 }
  0x25   :  { %126 = vmatpush.msra.mxu1 %v97_v27 }
  0x26   :  { %86 = vmatpush.msra.mxu0 %v55_v24 }
  0x27   :  { %127 = vmatpush.msra.mxu1 %v96_v30 }
  0x28   :  { %87 = vmatpush.msra.mxu0 %v54_v26 }
  0x29   :  { %128 = vmatpush.msra.mxu1 %v95_v31 }
  0x2a   :  { %88 = vmatpush.msra.mxu0 %v53_v28 }
  0x2b   :  { %89 = vmatmul.f32.vlgmr.msra.gmra.mxu0 %v52_v29  ;;  %129 = vmatpush.msra.mxu1 %v94_v32 }
  0xa8   :  { %v90_v34 = vpop.f32.mrf.mxu0 }
  0xa9   :  { %v91_v35 = vadd.f32 %v145_v33, %v90_v34 }
  0xab   :  { %v93_v36 = vmax.f32 %v91_v35, 0.0 }
  0xad   :  { %130 = vmatmul.f32.vlgmr.msra.gmra.mxu1 %v93_v36 }
 0x12a   :  { %v131_v38 = vpop.f32.mrf.mxu1 }
 0x12b   :  { %v132_v39 = vadd.f32 %v146_v37, %v131_v38 }
 0x12d   :  { %134 = vst [vmem:[%s256_s5] sm:$0xff] %v132_v39 }
 0x12e   :  { %139 = vsyncpa [#allocation3], 1 }
 0x12f   :  { %140 = vsyncpa [#allocation5], 1 }

</bundles_post_ra>
